<compile_context>
chip_gen: v5e
topology: v5e:2x2
jax: 0.10.0
libtpu: 0.0.40
codegen_flags: <defaults>
</compile_context>

<pallas_src>
import functools

import jax
import jax.numpy as jnp
from jax.experimental import pallas as pl
from jax.experimental.pallas import tpu as pltpu


def _knn_gather_kernel(pc_ref, pct_ref, nrm_ref, pcq_ref, nbr_ref, idx_ref,
                       *, k, idx_bits):
    P = pc_ref[0].astype(jnp.float32)        # (C, N)   reference points (VMEM-resident)
    Pt = pct_ref[0].astype(jnp.float32)      # (N, C)   pre-transposed reference points
    nrm_p = nrm_ref[0]                       # (N, 1)   hoisted ||p_m||^2 (f32)
    Pq = pcq_ref[0].astype(jnp.float32)      # (C, TN)  query point tile
    C = P.shape[0]

    # ---- pairwise squared distances, (N, TN): D[m, n] = ||p_m - q_n||^2 ----
    G = jnp.dot(Pt, Pq, preferred_element_type=jnp.float32)        # (N, TN) on MXU
    nrm_q = jnp.sum(Pq * Pq, axis=0, keepdims=True)                # (1, TN), cheap sublane reduce
    D = jnp.maximum(nrm_p + nrm_q - 2.0 * G, 0.0)                  # >= 0 so bitcast is monotone

    # ---- pack (distance, row index) into one monotone int32 key (keys are unique) ----
    rows = jax.lax.broadcasted_iota(jnp.int32, D.shape, 0)
    d_bits = pltpu.bitcast(D, jnp.int32)
    key0 = ((d_bits >> idx_bits) << idx_bits) | rows
    big = jnp.int32(jnp.iinfo(jnp.int32).max)
    low_mask = (1 << idx_bits) - 1

    # nearest entry is the query point itself -> dropped (idx[:, 1:, :] semantics)
    thr = jnp.min(key0, axis=0, keepdims=True)                     # (1, TN)

    out_dtype = nbr_ref.dtype
    # ---- unrolled threshold-based successive-min; key0 is read-only, never rewritten.
    #      The winner mask doubles as the one-hot gather matrix (fused MXU dot). ----
    for j in range(k):
        mk = jnp.min(jnp.where(key0 > thr, key0, big),
                     axis=0, keepdims=True)                        # (1, TN) fused min
        onehot = (key0 == mk).astype(jnp.float32)                  # (N, TN) exact one-hot
        nbr_j = jnp.dot(P, onehot, preferred_element_type=jnp.float32)  # (C, TN) gather on MXU
        nbr_ref[0, pl.ds(j * C, C), :] = nbr_j.astype(out_dtype)
        idx_ref[0, pl.ds(j, 1), :] = mk & low_mask                 # neighbor index
        thr = mk


def _knn_gather(point_cloud, k, tn=None, vmem_limit_bytes=48 * 1024 * 1024):
    """Returns (neighbors (B, K, C, N), idx (B, K, N)) via a Pallas kernel."""
    B, C, N = point_cloud.shape
    assert N > k, "need at least k+1 points per cloud"
    if tn is None:
        # 256 is lane-aligned and fits v7x's 64 MiB VMEM; sweep up to 512 on v5e/v6e.
        tn = N if N <= 256 else 256
    tn = min(tn, N)
    idx_bits = max(1, int(N - 1).bit_length())

    # Hoisted, computed once per batch (not once per tile inside the kernel).
    pc_t = jnp.swapaxes(point_cloud, 1, 2)                               # (B, N, C)
    nrm = jnp.sum(point_cloud.astype(jnp.float32) ** 2, axis=1)[:, :, None]  # (B, N, 1)

    kernel = functools.partial(_knn_gather_kernel, k=k, idx_bits=idx_bits)
    nbr_flat, idx = pl.pallas_call(
        kernel,
        out_shape=(
            jax.ShapeDtypeStruct((B, k * C, N), point_cloud.dtype),
            jax.ShapeDtypeStruct((B, k, N), jnp.int32),
        ),
        grid=(B, pl.cdiv(N, tn)),
        in_specs=[
            pl.BlockSpec((1, C, N), lambda b, t: (b, 0, 0)),      # reference points (C, N)
            pl.BlockSpec((1, N, C), lambda b, t: (b, 0, 0)),      # reference points^T (N, C)
            pl.BlockSpec((1, N, 1), lambda b, t: (b, 0, 0)),      # hoisted squared norms
            pl.BlockSpec((1, C, tn), lambda b, t: (b, 0, t)),     # query point tile
        ],
        out_specs=(
            pl.BlockSpec((1, k * C, tn), lambda b, t: (b, 0, t)),  # gathered neighbors
            pl.BlockSpec((1, k, tn), lambda b, t: (b, 0, t)),      # knn indices
        ),
        compiler_params=pltpu.CompilerParams(
            dimension_semantics=("parallel", "parallel"),
            vmem_limit_bytes=vmem_limit_bytes,
        ),
    )(point_cloud, pc_t, nrm, point_cloud)

    return nbr_flat.reshape(B, k, C, N), idx


def get_edge_feature(point_cloud, feat, k=16, tn=None):
    """point_cloud: (B, C, N); feat: (B, C, 3, N) -> (edge (B, 2C, K, 3, N), idx (B, K, N))."""
    B, C, N = point_cloud.shape
    assert feat.shape == (B, C, 3, N), feat.shape

    nbr_kcn, idx = _knn_gather(point_cloud, k, tn=tn)          # (B, K, C, N), (B, K, N)

    # Cheap broadcast arithmetic left to XLA so the kernel never writes the
    # replicated "central" half or the 3x-replicated neighbors (HBM roofline win).
    nbr = jnp.transpose(nbr_kcn, (0, 2, 1, 3))                  # (B, C, K, N)
    central = jnp.broadcast_to(feat[:, :, None, :, :], (B, C, k, 3, N))
    diff = nbr[:, :, :, None, :].astype(feat.dtype) - feat[:, :, None, :, :]
    edge = jnp.concatenate([central, diff], axis=1)             # (B, 2C, K, 3, N)
    return edge, idx


if __name__ == "__main__":
    key = jax.random.PRNGKey(0)
    k1, k2 = jax.random.split(key)
    B, C, N, K = 2, 4, 16, 8
    point_cloud = jax.random.normal(k1, (B, C, N), dtype=jnp.float32)
    feat = jax.random.normal(k2, (B, C, 3, N), dtype=jnp.float32)

    edge, idx = get_edge_feature(point_cloud, feat, k=K)
    edge, idx = jax.block_until_ready((edge, idx))

    # Pure-JAX reference (same semantics as KNN + grouping_operation + cat).
    d = point_cloud[:, :, :, None] - point_cloud[:, :, None, :]
    Dref = jnp.sum(d * d, axis=1)                                            # (B, n, m)
    order = jnp.argsort(Dref, axis=-1)                                       # (B, n, N)
    idx_r = jnp.transpose(order[:, :, 1:K + 1], (0, 2, 1)).astype(jnp.int32)
    pc_e = jnp.broadcast_to(point_cloud[:, :, None, :], (B, C, K, N))
    idx_e = jnp.broadcast_to(idx_r[:, None, :, :], (B, C, K, N)).astype(jnp.int32)
    nbr_r = jnp.take_along_axis(pc_e, idx_e, axis=-1)                        # (B, C, K, N)
    central = jnp.broadcast_to(feat[:, :, None, :, :], (B, C, K, 3, N))
    diff = nbr_r[:, :, :, None, :] - feat[:, :, None, :, :]
    edge_r = jnp.concatenate([central, diff], axis=1)                        # (B, 2C, K, 3, N)

    assert edge.shape == (B, 2 * C, K, 3, N) and idx.shape == (B, K, N)
    assert jnp.array_equal(idx, idx_r), "idx mismatch vs reference"
    assert jnp.allclose(edge, edge_r, atol=1e-5, rtol=1e-5), "edge feature mismatch"
    print("KERNEL_OK")
</pallas_src>

<mosaic_0001>
module attributes {stable_mosaic.version = 11 : i64} {
  func.func @_knn_gather_kernel(%arg0: i32, %arg1: i32, %arg2: memref<1x4x16xf32, #tpu.memory_space<vmem>>, %arg3: memref<1x16x4xf32, #tpu.memory_space<vmem>>, %arg4: memref<1x16x1xf32, #tpu.memory_space<vmem>>, %arg5: memref<1x4x16xf32, #tpu.memory_space<vmem>>, %arg6: memref<1x32x16xf32, #tpu.memory_space<vmem>>, %arg7: memref<1x8x16xi32, #tpu.memory_space<vmem>>) attributes {dimension_semantics = [#tpu.dimension_semantics<parallel>, #tpu.dimension_semantics<parallel>], iteration_bounds = array<i64: 2, 1>, scalar_prefetch = 0 : i64, scratch_operands = 0 : i64, tpu.core_type = #tpu.core_type<tc>, window_params = [{transform_indices = @transform_0, window_bounds = array<i64: 1, 4, 16>}, {transform_indices = @transform_1, window_bounds = array<i64: 1, 16, 4>}, {transform_indices = @transform_2, window_bounds = array<i64: 1, 16, 1>}, {transform_indices = @transform_3, window_bounds = array<i64: 1, 4, 16>}, {transform_indices = @transform_4, window_bounds = array<i64: 1, 32, 16>}, {transform_indices = @transform_5, window_bounds = array<i64: 1, 8, 16>}]} {
    %c0 = arith.constant 0 : index
    %c0_0 = arith.constant 0 : index
    %c0_1 = arith.constant 0 : index
    %0 = vector.load %arg2[%c0, %c0_0, %c0_1] : memref<1x4x16xf32, #tpu.memory_space<vmem>>, vector<1x4x16xf32>
    %1 = vector.shape_cast %0 : vector<1x4x16xf32> to vector<4x16xf32>
    %c0_2 = arith.constant 0 : index
    %c0_3 = arith.constant 0 : index
    %c0_4 = arith.constant 0 : index
    %2 = vector.load %arg3[%c0_2, %c0_3, %c0_4] : memref<1x16x4xf32, #tpu.memory_space<vmem>>, vector<1x16x4xf32>
    %3 = vector.shape_cast %2 : vector<1x16x4xf32> to vector<16x4xf32>
    %c0_5 = arith.constant 0 : index
    %c0_6 = arith.constant 0 : index
    %c0_7 = arith.constant 0 : index
    %4 = vector.load %arg4[%c0_5, %c0_6, %c0_7] : memref<1x16x1xf32, #tpu.memory_space<vmem>>, vector<1x16x1xf32>
    %5 = vector.shape_cast %4 : vector<1x16x1xf32> to vector<16x1xf32>
    %c0_8 = arith.constant 0 : index
    %c0_9 = arith.constant 0 : index
    %c0_10 = arith.constant 0 : index
    %6 = vector.load %arg5[%c0_8, %c0_9, %c0_10] : memref<1x4x16xf32, #tpu.memory_space<vmem>>, vector<1x4x16xf32>
    %7 = vector.shape_cast %6 : vector<1x4x16xf32> to vector<4x16xf32>
    %cst = arith.constant dense<0.000000e+00> : vector<16x16xf32>
    %8 = tpu.matmul %3, %7, %cst {dimension_numbers = #tpu.dot_dimension_numbers<[1], [0], [0], [1], [0, 0, 1, 1], [], []>} : vector<16x4xf32>, vector<4x16xf32>, vector<16x16xf32> -> vector<16x16xf32>
    %9 = arith.mulf %7, %7 : vector<4x16xf32>
    %cst_11 = arith.constant dense<0.000000e+00> : vector<16xf32>
    %10 = vector.multi_reduction <add>, %9, %cst_11 [0] : vector<4x16xf32> to vector<16xf32>
    %11 = vector.shape_cast %10 : vector<16xf32> to vector<1x16xf32>
    %12 = vector.broadcast %5 : vector<16x1xf32> to vector<16x16xf32>
    %13 = vector.broadcast %11 : vector<1x16xf32> to vector<16x16xf32>
    %14 = arith.addf %12, %13 : vector<16x16xf32>
    %cst_12 = arith.constant 2.000000e+00 : f32
    %15 = vector.broadcast %cst_12 : f32 to vector<16x16xf32>
    %16 = arith.mulf %15, %8 : vector<16x16xf32>
    %17 = arith.subf %14, %16 : vector<16x16xf32>
    %cst_13 = arith.constant 0.000000e+00 : f32
    %18 = vector.broadcast %cst_13 : f32 to vector<16x16xf32>
    %19 = arith.maximumf %17, %18 : vector<16x16xf32>
    %20 = tpu.iota {dimensions = array<i32: 0>} : vector<16x16xi32>
    %21 = tpu.bitcast %19 : vector<16x16xf32> -> vector<16x16xi32>
    %c4_i32 = arith.constant 4 : i32
    %22 = vector.broadcast %c4_i32 : i32 to vector<16x16xi32>
    %23 = arith.shrsi %21, %22 : vector<16x16xi32>
    %c4_i32_14 = arith.constant 4 : i32
    %24 = vector.broadcast %c4_i32_14 : i32 to vector<16x16xi32>
    %25 = arith.shli %23, %24 : vector<16x16xi32>
    %26 = arith.ori %25, %20 : vector<16x16xi32>
    %cst_15 = arith.constant dense<2147483647> : vector<16xi32>
    %27 = vector.multi_reduction <minsi>, %26, %cst_15 [0] : vector<16x16xi32> to vector<16xi32>
    %28 = vector.shape_cast %27 : vector<16xi32> to vector<1x16xi32>
    %29 = vector.broadcast %28 : vector<1x16xi32> to vector<16x16xi32>
    %30 = arith.cmpi sgt, %26, %29 : vector<16x16xi32>
    %c2147483647_i32 = arith.constant 2147483647 : i32
    %31 = vector.broadcast %c2147483647_i32 : i32 to vector<16x16xi32>
    %32 = arith.select %30, %26, %31 : vector<16x16xi1>, vector<16x16xi32>
    %cst_16 = arith.constant dense<2147483647> : vector<16xi32>
    %33 = vector.multi_reduction <minsi>, %32, %cst_16 [0] : vector<16x16xi32> to vector<16xi32>
    %34 = vector.shape_cast %33 : vector<16xi32> to vector<1x16xi32>
    %35 = vector.broadcast %34 : vector<1x16xi32> to vector<16x16xi32>
    %36 = arith.cmpi eq, %26, %35 : vector<16x16xi32>
    %37 = arith.extui %36 : vector<16x16xi1> to vector<16x16xi32>
    %38 = arith.sitofp %37 : vector<16x16xi32> to vector<16x16xf32>
    %cst_17 = arith.constant dense<0.000000e+00> : vector<4x16xf32>
    %39 = tpu.matmul %1, %38, %cst_17 {dimension_numbers = #tpu.dot_dimension_numbers<[1], [0], [0], [1], [0, 0, 1, 1], [], []>} : vector<4x16xf32>, vector<16x16xf32>, vector<4x16xf32> -> vector<4x16xf32>
    %c0_18 = arith.constant 0 : index
    %c0_19 = arith.constant 0 : index
    %c0_20 = arith.constant 0 : index
    %40 = vector.load %arg6[%c0_18, %c0_19, %c0_20] : memref<1x32x16xf32, #tpu.memory_space<vmem>>, vector<1x4x16xf32>
    %41 = vector.shape_cast %40 : vector<1x4x16xf32> to vector<4x16xf32>
    %42 = vector.shape_cast %39 : vector<4x16xf32> to vector<1x4x16xf32>
    tpu.vector_store %arg6[%c0_18, %c0_19, %c0_20], %42 {strides = array<i32>} : memref<1x32x16xf32, #tpu.memory_space<vmem>>, vector<1x4x16xf32>,
    %c15_i32 = arith.constant 15 : i32
    %43 = vector.broadcast %c15_i32 : i32 to vector<1x16xi32>
    %44 = arith.andi %34, %43 : vector<1x16xi32>
    %c0_21 = arith.constant 0 : index
    %c0_22 = arith.constant 0 : index
    %c0_23 = arith.constant 0 : index
    %45 = vector.load %arg7[%c0_21, %c0_22, %c0_23] : memref<1x8x16xi32, #tpu.memory_space<vmem>>, vector<1x1x16xi32>
    %46 = vector.shape_cast %45 : vector<1x1x16xi32> to vector<1x16xi32>
    %47 = vector.shape_cast %44 : vector<1x16xi32> to vector<1x1x16xi32>
    tpu.vector_store %arg7[%c0_21, %c0_22, %c0_23], %47 {strides = array<i32>} : memref<1x8x16xi32, #tpu.memory_space<vmem>>, vector<1x1x16xi32>,
    %48 = vector.broadcast %34 : vector<1x16xi32> to vector<16x16xi32>
    %49 = arith.cmpi sgt, %26, %48 : vector<16x16xi32>
    %c2147483647_i32_24 = arith.constant 2147483647 : i32
    %50 = vector.broadcast %c2147483647_i32_24 : i32 to vector<16x16xi32>
    %51 = arith.select %49, %26, %50 : vector<16x16xi1>, vector<16x16xi32>
    %cst_25 = arith.constant dense<2147483647> : vector<16xi32>
    %52 = vector.multi_reduction <minsi>, %51, %cst_25 [0] : vector<16x16xi32> to vector<16xi32>
    %53 = vector.shape_cast %52 : vector<16xi32> to vector<1x16xi32>
    %54 = vector.broadcast %53 : vector<1x16xi32> to vector<16x16xi32>
    %55 = arith.cmpi eq, %26, %54 : vector<16x16xi32>
    %56 = arith.extui %55 : vector<16x16xi1> to vector<16x16xi32>
    %57 = arith.sitofp %56 : vector<16x16xi32> to vector<16x16xf32>
    %cst_26 = arith.constant dense<0.000000e+00> : vector<4x16xf32>
    %58 = tpu.matmul %1, %57, %cst_26 {dimension_numbers = #tpu.dot_dimension_numbers<[1], [0], [0], [1], [0, 0, 1, 1], [], []>} : vector<4x16xf32>, vector<16x16xf32>, vector<4x16xf32> -> vector<4x16xf32>
    %c0_27 = arith.constant 0 : index
    %c4 = arith.constant 4 : index
    %c0_28 = arith.constant 0 : index
    %59 = vector.load %arg6[%c0_27, %c4, %c0_28] : memref<1x32x16xf32, #tpu.memory_space<vmem>>, vector<1x4x16xf32>
    %60 = vector.shape_cast %59 : vector<1x4x16xf32> to vector<4x16xf32>
    %61 = vector.shape_cast %58 : vector<4x16xf32> to vector<1x4x16xf32>
    tpu.vector_store %arg6[%c0_27, %c4, %c0_28], %61 {strides = array<i32>} : memref<1x32x16xf32, #tpu.memory_space<vmem>>, vector<1x4x16xf32>,
    %c15_i32_29 = arith.constant 15 : i32
    %62 = vector.broadcast %c15_i32_29 : i32 to vector<1x16xi32>
    %63 = arith.andi %53, %62 : vector<1x16xi32>
    %c0_30 = arith.constant 0 : index
    %c1 = arith.constant 1 : index
    %c0_31 = arith.constant 0 : index
    %64 = vector.load %arg7[%c0_30, %c1, %c0_31] : memref<1x8x16xi32, #tpu.memory_space<vmem>>, vector<1x1x16xi32>
    %65 = vector.shape_cast %64 : vector<1x1x16xi32> to vector<1x16xi32>
    %66 = vector.shape_cast %63 : vector<1x16xi32> to vector<1x1x16xi32>
    tpu.vector_store %arg7[%c0_30, %c1, %c0_31], %66 {strides = array<i32>} : memref<1x8x16xi32, #tpu.memory_space<vmem>>, vector<1x1x16xi32>,
    %67 = vector.broadcast %53 : vector<1x16xi32> to vector<16x16xi32>
    %68 = arith.cmpi sgt, %26, %67 : vector<16x16xi32>
    %c2147483647_i32_32 = arith.constant 2147483647 : i32
    %69 = vector.broadcast %c2147483647_i32_32 : i32 to vector<16x16xi32>
    %70 = arith.select %68, %26, %69 : vector<16x16xi1>, vector<16x16xi32>
    %cst_33 = arith.constant dense<2147483647> : vector<16xi32>
    %71 = vector.multi_reduction <minsi>, %70, %cst_33 [0] : vector<16x16xi32> to vector<16xi32>
    %72 = vector.shape_cast %71 : vector<16xi32> to vector<1x16xi32>
    %73 = vector.broadcast %72 : vector<1x16xi32> to vector<16x16xi32>
    %74 = arith.cmpi eq, %26, %73 : vector<16x16xi32>
    %75 = arith.extui %74 : vector<16x16xi1> to vector<16x16xi32>
    %76 = arith.sitofp %75 : vector<16x16xi32> to vector<16x16xf32>
    %cst_34 = arith.constant dense<0.000000e+00> : vector<4x16xf32>
    %77 = tpu.matmul %1, %76, %cst_34 {dimension_numbers = #tpu.dot_dimension_numbers<[1], [0], [0], [1], [0, 0, 1, 1], [], []>} : vector<4x16xf32>, vector<16x16xf32>, vector<4x16xf32> -> vector<4x16xf32>
    %c0_35 = arith.constant 0 : index
    %c8 = arith.constant 8 : index
    %c0_36 = arith.constant 0 : index
    %78 = vector.load %arg6[%c0_35, %c8, %c0_36] : memref<1x32x16xf32, #tpu.memory_space<vmem>>, vector<1x4x16xf32>
    %79 = vector.shape_cast %78 : vector<1x4x16xf32> to vector<4x16xf32>
    %80 = vector.shape_cast %77 : vector<4x16xf32> to vector<1x4x16xf32>
    tpu.vector_store %arg6[%c0_35, %c8, %c0_36], %80 {strides = array<i32>} : memref<1x32x16xf32, #tpu.memory_space<vmem>>, vector<1x4x16xf32>,
    %c15_i32_37 = arith.constant 15 : i32
    %81 = vector.broadcast %c15_i32_37 : i32 to vector<1x16xi32>
    %82 = arith.andi %72, %81 : vector<1x16xi32>
    %c0_38 = arith.constant 0 : index
    %c2 = arith.constant 2 : index
    %c0_39 = arith.constant 0 : index
    %83 = vector.load %arg7[%c0_38, %c2, %c0_39] : memref<1x8x16xi32, #tpu.memory_space<vmem>>, vector<1x1x16xi32>
    %84 = vector.shape_cast %83 : vector<1x1x16xi32> to vector<1x16xi32>
    %85 = vector.shape_cast %82 : vector<1x16xi32> to vector<1x1x16xi32>
    tpu.vector_store %arg7[%c0_38, %c2, %c0_39], %85 {strides = array<i32>} : memref<1x8x16xi32, #tpu.memory_space<vmem>>, vector<1x1x16xi32>,
    %86 = vector.broadcast %72 : vector<1x16xi32> to vector<16x16xi32>
    %87 = arith.cmpi sgt, %26, %86 : vector<16x16xi32>
    %c2147483647_i32_40 = arith.constant 2147483647 : i32
    %88 = vector.broadcast %c2147483647_i32_40 : i32 to vector<16x16xi32>
    %89 = arith.select %87, %26, %88 : vector<16x16xi1>, vector<16x16xi32>
    %cst_41 = arith.constant dense<2147483647> : vector<16xi32>
    %90 = vector.multi_reduction <minsi>, %89, %cst_41 [0] : vector<16x16xi32> to vector<16xi32>
    %91 = vector.shape_cast %90 : vector<16xi32> to vector<1x16xi32>
    %92 = vector.broadcast %91 : vector<1x16xi32> to vector<16x16xi32>
    %93 = arith.cmpi eq, %26, %92 : vector<16x16xi32>
    %94 = arith.extui %93 : vector<16x16xi1> to vector<16x16xi32>
    %95 = arith.sitofp %94 : vector<16x16xi32> to vector<16x16xf32>
    %cst_42 = arith.constant dense<0.000000e+00> : vector<4x16xf32>
    %96 = tpu.matmul %1, %95, %cst_42 {dimension_numbers = #tpu.dot_dimension_numbers<[1], [0], [0], [1], [0, 0, 1, 1], [], []>} : vector<4x16xf32>, vector<16x16xf32>, vector<4x16xf32> -> vector<4x16xf32>
    %c0_43 = arith.constant 0 : index
    %c12 = arith.constant 12 : index
    %c0_44 = arith.constant 0 : index
    %97 = vector.load %arg6[%c0_43, %c12, %c0_44] : memref<1x32x16xf32, #tpu.memory_space<vmem>>, vector<1x4x16xf32>
    %98 = vector.shape_cast %97 : vector<1x4x16xf32> to vector<4x16xf32>
    %99 = vector.shape_cast %96 : vector<4x16xf32> to vector<1x4x16xf32>
    tpu.vector_store %arg6[%c0_43, %c12, %c0_44], %99 {strides = array<i32>} : memref<1x32x16xf32, #tpu.memory_space<vmem>>, vector<1x4x16xf32>,
    %c15_i32_45 = arith.constant 15 : i32
    %100 = vector.broadcast %c15_i32_45 : i32 to vector<1x16xi32>
    %101 = arith.andi %91, %100 : vector<1x16xi32>
    %c0_46 = arith.constant 0 : index
    %c3 = arith.constant 3 : index
    %c0_47 = arith.constant 0 : index
    %102 = vector.load %arg7[%c0_46, %c3, %c0_47] : memref<1x8x16xi32, #tpu.memory_space<vmem>>, vector<1x1x16xi32>
    %103 = vector.shape_cast %102 : vector<1x1x16xi32> to vector<1x16xi32>
    %104 = vector.shape_cast %101 : vector<1x16xi32> to vector<1x1x16xi32>
    tpu.vector_store %arg7[%c0_46, %c3, %c0_47], %104 {strides = array<i32>} : memref<1x8x16xi32, #tpu.memory_space<vmem>>, vector<1x1x16xi32>,
    %105 = vector.broadcast %91 : vector<1x16xi32> to vector<16x16xi32>
    %106 = arith.cmpi sgt, %26, %105 : vector<16x16xi32>
    %c2147483647_i32_48 = arith.constant 2147483647 : i32
    %107 = vector.broadcast %c2147483647_i32_48 : i32 to vector<16x16xi32>
    %108 = arith.select %106, %26, %107 : vector<16x16xi1>, vector<16x16xi32>
    %cst_49 = arith.constant dense<2147483647> : vector<16xi32>
    %109 = vector.multi_reduction <minsi>, %108, %cst_49 [0] : vector<16x16xi32> to vector<16xi32>
    %110 = vector.shape_cast %109 : vector<16xi32> to vector<1x16xi32>
    %111 = vector.broadcast %110 : vector<1x16xi32> to vector<16x16xi32>
    %112 = arith.cmpi eq, %26, %111 : vector<16x16xi32>
    %113 = arith.extui %112 : vector<16x16xi1> to vector<16x16xi32>
    %114 = arith.sitofp %113 : vector<16x16xi32> to vector<16x16xf32>
    %cst_50 = arith.constant dense<0.000000e+00> : vector<4x16xf32>
    %115 = tpu.matmul %1, %114, %cst_50 {dimension_numbers = #tpu.dot_dimension_numbers<[1], [0], [0], [1], [0, 0, 1, 1], [], []>} : vector<4x16xf32>, vector<16x16xf32>, vector<4x16xf32> -> vector<4x16xf32>
    %c0_51 = arith.constant 0 : index
    %c16 = arith.constant 16 : index
    %c0_52 = arith.constant 0 : index
    %116 = vector.load %arg6[%c0_51, %c16, %c0_52] : memref<1x32x16xf32, #tpu.memory_space<vmem>>, vector<1x4x16xf32>
    %117 = vector.shape_cast %116 : vector<1x4x16xf32> to vector<4x16xf32>
    %118 = vector.shape_cast %115 : vector<4x16xf32> to vector<1x4x16xf32>
    tpu.vector_store %arg6[%c0_51, %c16, %c0_52], %118 {strides = array<i32>} : memref<1x32x16xf32, #tpu.memory_space<vmem>>, vector<1x4x16xf32>,
    %c15_i32_53 = arith.constant 15 : i32
    %119 = vector.broadcast %c15_i32_53 : i32 to vector<1x16xi32>
    %120 = arith.andi %110, %119 : vector<1x16xi32>
    %c0_54 = arith.constant 0 : index
    %c4_55 = arith.constant 4 : index
    %c0_56 = arith.constant 0 : index
    %121 = vector.load %arg7[%c0_54, %c4_55, %c0_56] : memref<1x8x16xi32, #tpu.memory_space<vmem>>, vector<1x1x16xi32>
    %122 = vector.shape_cast %121 : vector<1x1x16xi32> to vector<1x16xi32>
    %123 = vector.shape_cast %120 : vector<1x16xi32> to vector<1x1x16xi32>
    tpu.vector_store %arg7[%c0_54, %c4_55, %c0_56], %123 {strides = array<i32>} : memref<1x8x16xi32, #tpu.memory_space<vmem>>, vector<1x1x16xi32>,
    %124 = vector.broadcast %110 : vector<1x16xi32> to vector<16x16xi32>
    %125 = arith.cmpi sgt, %26, %124 : vector<16x16xi32>
    %c2147483647_i32_57 = arith.constant 2147483647 : i32
    %126 = vector.broadcast %c2147483647_i32_57 : i32 to vector<16x16xi32>
    %127 = arith.select %125, %26, %126 : vector<16x16xi1>, vector<16x16xi32>
    %cst_58 = arith.constant dense<2147483647> : vector<16xi32>
    %128 = vector.multi_reduction <minsi>, %127, %cst_58 [0] : vector<16x16xi32> to vector<16xi32>
    %129 = vector.shape_cast %128 : vector<16xi32> to vector<1x16xi32>
    %130 = vector.broadcast %129 : vector<1x16xi32> to vector<16x16xi32>
    %131 = arith.cmpi eq, %26, %130 : vector<16x16xi32>
    %132 = arith.extui %131 : vector<16x16xi1> to vector<16x16xi32>
    %133 = arith.sitofp %132 : vector<16x16xi32> to vector<16x16xf32>
    %cst_59 = arith.constant dense<0.000000e+00> : vector<4x16xf32>
    %134 = tpu.matmul %1, %133, %cst_59 {dimension_numbers = #tpu.dot_dimension_numbers<[1], [0], [0], [1], [0, 0, 1, 1], [], []>} : vector<4x16xf32>, vector<16x16xf32>, vector<4x16xf32> -> vector<4x16xf32>
    %c0_60 = arith.constant 0 : index
    %c20 = arith.constant 20 : index
    %c0_61 = arith.constant 0 : index
    %135 = vector.load %arg6[%c0_60, %c20, %c0_61] : memref<1x32x16xf32, #tpu.memory_space<vmem>>, vector<1x4x16xf32>
    %136 = vector.shape_cast %135 : vector<1x4x16xf32> to vector<4x16xf32>
    %137 = vector.shape_cast %134 : vector<4x16xf32> to vector<1x4x16xf32>
    tpu.vector_store %arg6[%c0_60, %c20, %c0_61], %137 {strides = array<i32>} : memref<1x32x16xf32, #tpu.memory_space<vmem>>, vector<1x4x16xf32>,
    %c15_i32_62 = arith.constant 15 : i32
    %138 = vector.broadcast %c15_i32_62 : i32 to vector<1x16xi32>
    %139 = arith.andi %129, %138 : vector<1x16xi32>
    %c0_63 = arith.constant 0 : index
    %c5 = arith.constant 5 : index
    %c0_64 = arith.constant 0 : index
    %140 = vector.load %arg7[%c0_63, %c5, %c0_64] : memref<1x8x16xi32, #tpu.memory_space<vmem>>, vector<1x1x16xi32>
    %141 = vector.shape_cast %140 : vector<1x1x16xi32> to vector<1x16xi32>
    %142 = vector.shape_cast %139 : vector<1x16xi32> to vector<1x1x16xi32>
    tpu.vector_store %arg7[%c0_63, %c5, %c0_64], %142 {strides = array<i32>} : memref<1x8x16xi32, #tpu.memory_space<vmem>>, vector<1x1x16xi32>,
    %143 = vector.broadcast %129 : vector<1x16xi32> to vector<16x16xi32>
    %144 = arith.cmpi sgt, %26, %143 : vector<16x16xi32>
    %c2147483647_i32_65 = arith.constant 2147483647 : i32
    %145 = vector.broadcast %c2147483647_i32_65 : i32 to vector<16x16xi32>
    %146 = arith.select %144, %26, %145 : vector<16x16xi1>, vector<16x16xi32>
    %cst_66 = arith.constant dense<2147483647> : vector<16xi32>
    %147 = vector.multi_reduction <minsi>, %146, %cst_66 [0] : vector<16x16xi32> to vector<16xi32>
    %148 = vector.shape_cast %147 : vector<16xi32> to vector<1x16xi32>
    %149 = vector.broadcast %148 : vector<1x16xi32> to vector<16x16xi32>
    %150 = arith.cmpi eq, %26, %149 : vector<16x16xi32>
    %151 = arith.extui %150 : vector<16x16xi1> to vector<16x16xi32>
    %152 = arith.sitofp %151 : vector<16x16xi32> to vector<16x16xf32>
    %cst_67 = arith.constant dense<0.000000e+00> : vector<4x16xf32>
    %153 = tpu.matmul %1, %152, %cst_67 {dimension_numbers = #tpu.dot_dimension_numbers<[1], [0], [0], [1], [0, 0, 1, 1], [], []>} : vector<4x16xf32>, vector<16x16xf32>, vector<4x16xf32> -> vector<4x16xf32>
    %c0_68 = arith.constant 0 : index
    %c24 = arith.constant 24 : index
    %c0_69 = arith.constant 0 : index
    %154 = vector.load %arg6[%c0_68, %c24, %c0_69] : memref<1x32x16xf32, #tpu.memory_space<vmem>>, vector<1x4x16xf32>
    %155 = vector.shape_cast %154 : vector<1x4x16xf32> to vector<4x16xf32>
    %156 = vector.shape_cast %153 : vector<4x16xf32> to vector<1x4x16xf32>
    tpu.vector_store %arg6[%c0_68, %c24, %c0_69], %156 {strides = array<i32>} : memref<1x32x16xf32, #tpu.memory_space<vmem>>, vector<1x4x16xf32>,
    %c15_i32_70 = arith.constant 15 : i32
    %157 = vector.broadcast %c15_i32_70 : i32 to vector<1x16xi32>
    %158 = arith.andi %148, %157 : vector<1x16xi32>
    %c0_71 = arith.constant 0 : index
    %c6 = arith.constant 6 : index
    %c0_72 = arith.constant 0 : index
    %159 = vector.load %arg7[%c0_71, %c6, %c0_72] : memref<1x8x16xi32, #tpu.memory_space<vmem>>, vector<1x1x16xi32>
    %160 = vector.shape_cast %159 : vector<1x1x16xi32> to vector<1x16xi32>
    %161 = vector.shape_cast %158 : vector<1x16xi32> to vector<1x1x16xi32>
    tpu.vector_store %arg7[%c0_71, %c6, %c0_72], %161 {strides = array<i32>} : memref<1x8x16xi32, #tpu.memory_space<vmem>>, vector<1x1x16xi32>,
    %162 = vector.broadcast %148 : vector<1x16xi32> to vector<16x16xi32>
    %163 = arith.cmpi sgt, %26, %162 : vector<16x16xi32>
    %c2147483647_i32_73 = arith.constant 2147483647 : i32
    %164 = vector.broadcast %c2147483647_i32_73 : i32 to vector<16x16xi32>
    %165 = arith.select %163, %26, %164 : vector<16x16xi1>, vector<16x16xi32>
    %cst_74 = arith.constant dense<2147483647> : vector<16xi32>
    %166 = vector.multi_reduction <minsi>, %165, %cst_74 [0] : vector<16x16xi32> to vector<16xi32>
    %167 = vector.shape_cast %166 : vector<16xi32> to vector<1x16xi32>
    %168 = vector.broadcast %167 : vector<1x16xi32> to vector<16x16xi32>
    %169 = arith.cmpi eq, %26, %168 : vector<16x16xi32>
    %170 = arith.extui %169 : vector<16x16xi1> to vector<16x16xi32>
    %171 = arith.sitofp %170 : vector<16x16xi32> to vector<16x16xf32>
    %cst_75 = arith.constant dense<0.000000e+00> : vector<4x16xf32>
    %172 = tpu.matmul %1, %171, %cst_75 {dimension_numbers = #tpu.dot_dimension_numbers<[1], [0], [0], [1], [0, 0, 1, 1], [], []>} : vector<4x16xf32>, vector<16x16xf32>, vector<4x16xf32> -> vector<4x16xf32>
    %c0_76 = arith.constant 0 : index
    %c28 = arith.constant 28 : index
    %c0_77 = arith.constant 0 : index
    %173 = vector.load %arg6[%c0_76, %c28, %c0_77] : memref<1x32x16xf32, #tpu.memory_space<vmem>>, vector<1x4x16xf32>
    %174 = vector.shape_cast %173 : vector<1x4x16xf32> to vector<4x16xf32>
    %175 = vector.shape_cast %172 : vector<4x16xf32> to vector<1x4x16xf32>
    tpu.vector_store %arg6[%c0_76, %c28, %c0_77], %175 {strides = array<i32>} : memref<1x32x16xf32, #tpu.memory_space<vmem>>, vector<1x4x16xf32>,
    %c15_i32_78 = arith.constant 15 : i32
    %176 = vector.broadcast %c15_i32_78 : i32 to vector<1x16xi32>
    %177 = arith.andi %167, %176 : vector<1x16xi32>
    %c0_79 = arith.constant 0 : index
    %c7 = arith.constant 7 : index
    %c0_80 = arith.constant 0 : index
    %178 = vector.load %arg7[%c0_79, %c7, %c0_80] : memref<1x8x16xi32, #tpu.memory_space<vmem>>, vector<1x1x16xi32>
    %179 = vector.shape_cast %178 : vector<1x1x16xi32> to vector<1x16xi32>
    %180 = vector.shape_cast %177 : vector<1x16xi32> to vector<1x1x16xi32>
    tpu.vector_store %arg7[%c0_79, %c7, %c0_80], %180 {strides = array<i32>} : memref<1x8x16xi32, #tpu.memory_space<vmem>>, vector<1x1x16xi32>,
    return
  }
  func.func @transform_0(%arg0: i32, %arg1: i32) -> (i32, i32, i32) {
    %c0_i32 = arith.constant 0 : i32
    %c0_i32_0 = arith.constant 0 : i32
    %c0_i32_1 = arith.constant 0 : i32
    return %arg0, %c0_i32, %c0_i32_0 : i32, i32, i32
  }
  func.func @transform_1(%arg0: i32, %arg1: i32) -> (i32, i32, i32) {
    %c0_i32 = arith.constant 0 : i32
    %c0_i32_0 = arith.constant 0 : i32
    %c0_i32_1 = arith.constant 0 : i32
    return %arg0, %c0_i32, %c0_i32_0 : i32, i32, i32
  }
  func.func @transform_2(%arg0: i32, %arg1: i32) -> (i32, i32, i32) {
    %c0_i32 = arith.constant 0 : i32
    %c0_i32_0 = arith.constant 0 : i32
    %c0_i32_1 = arith.constant 0 : i32
    return %arg0, %c0_i32, %c0_i32_0 : i32, i32, i32
  }
  func.func @transform_3(%arg0: i32, %arg1: i32) -> (i32, i32, i32) {
    %c0_i32 = arith.constant 0 : i32
    %c0_i32_0 = arith.constant 0 : i32
    return %arg0, %c0_i32, %arg1 : i32, i32, i32
  }
  func.func @transform_4(%arg0: i32, %arg1: i32) -> (i32, i32, i32) {
    %c0_i32 = arith.constant 0 : i32
    %c0_i32_0 = arith.constant 0 : i32
    return %arg0, %c0_i32, %arg1 : i32, i32, i32
  }
  func.func @transform_5(%arg0: i32, %arg1: i32) -> (i32, i32, i32) {
    %c0_i32 = arith.constant 0 : i32
    %c0_i32_0 = arith.constant 0 : i32
    return %arg0, %c0_i32, %arg1 : i32, i32, i32
  }
}

</mosaic_0001>

<bundles_post_ra>
// kernel: tpu_custom_call.1
= control target key start
LH: loop header
LB: loop body
LE: loop exit
PB: predicated region body
PF: predicated region fallthrough
CT: control target
= control target key end

     0   :  { %11 = vsyncpa [#allocation3], 0  ;;  %s1448_s0 = inlined_call_operand.vmem [shape: f32[2,4,16], index: 0, kind: input, shape index: {}]   ;;  %s1449_s1 = inlined_call_operand.vmem [shape: f32[2,16,4], index: 1, kind: input, shape index: {}]   ;;  %s1450_s2 = inlined_call_operand.vmem [shape: f32[2,16,1], index: 2, kind: input, shape index: {}]   ;;  %s1451_s3 = inlined_call_operand.vmem [shape: f32[2,4,16], index: 3, kind: input, shape index: {}]   ;;  %s1452_s4 = inlined_call_operand.vmem [shape: f32[2,32,16], index: 4, kind: output, shape index: {0}]   ;;  %s1453_s5 = inlined_call_operand.hbm [shape: s32[2,8,16], index: 5, kind: output, shape index: {1}]  }
   0x1   :  { %13 = vsyncpa [#allocation3 + $0x1], 0  ;;  %s1192_s18 = smov 0   ;;  %s1194_s19 = smov 0  }
   0x2   :  { %s1196_s20 = smov 0   ;;  %s1198_s21 = smov 0  }
   0x3   :  { %s1200_s22 = smov 0   ;;  %s1202_s23 = smov 0  }
   0x4 LB: > { %s958_s24 = sadd.s32 4294967295, %s1158_s23   ;;  %s959_s25 = sadd.s32 4294967294, %s1158_s23   ;;  %s1158_s23 = sphi %s1202_s23, %s19_s23   ;;  %s1154_s22 = sphi %s1200_s22, %s1460_s22   ;;  %s1150_s21 = sphi %s1198_s21, %s1459_s21   ;;  %s1146_s20 = sphi %s1196_s20, %s1458_s20   ;;  %s1142_s19 = sphi %s1194_s19, %s1457_s19   ;;  %s1138_s18 = sphi %s1192_s18, %s1456_s18  }
   0x5   : > { %s31_s26 = sadd.s32 1, %s1154_s22  ;;  %s174_s27 = sadd.s32 1, %s1146_s20 }
   0x6   : > { %p33_p0 = scmp.ge.s32.totalorder %s31_s26, 2  ;;  %p184_p1 = scmp.ne.s32.totalorder %s1146_s20, %s1142_s19 }
   0x7   : > { %p185_p2 = scmp.eq.s32.totalorder %s958_s24, 1  ;;  %p190_p3 = scmp.ne.s32.totalorder %s1142_s19, %s1138_s18 }
   0x8   : > { %s1462_s26 = smov (%p33_p0, %s31_s26), 0  ;;  %p191_p5 = scmp.eq.s32.totalorder %s959_s25, 1 }
   0x9   : > { %p1232_p4 = por %p185_p2, %p184_p1  ;;  %s169_s29 = ssub.s32 %s1154_s22, %s1462_s26 }
   0xa   : > { %p962_p6 = scmp.ge.s32.totalorder %s1158_s23, 1  ;;  %p172_p7 = scmp.eq.s32.totalorder %s169_s29, 0 }
   0xb   : > { %p1239_p8 = por %p191_p5, %p190_p3  ;;  %p242_p9 = scmp.lt.s32.totalorder %s1158_s23, 3 }
   0xc   : > { %s1245_s6 = scalar_select %p172_p7, %s1146_s20, %s174_s27  }
   0xd   : > { %p243_p10 = pnand %p962_p6, %p242_p9 }
   0xe   : > { %p294_p11 = scmp.lt.s32.totalorder (!%p243_p10), %s1150_s21, 1  ;;  %s291_s25 = sand.u32 (!%p243_p10), 1, %s1142_s19  }
   0xf   : > { %246 = sbr.rel (%p243_p10) target bundleno = 454 (0x1c6), region = 36  ;;  %s963_s27 = sshll.u32 (!%p243_p10), %s291_s25, 3 }
  0x10   : > { %s1100_s9 = scalar_lea.hbm (!%p243_p10), %s1453_s5, 16 }
  0x14   : > { %v1160_v0 = vmov 0   ;;  %s1249_s7 = scalar_select %p294_p11, %s1150_s21, 1  ;;  %vm336_vm0 = vcmask 1043456   ;;  %vm329_vm1 = vcmask 31744   ;;  %vm364_vm2 = vcmask 125952  }
  0x15   : > { %1079 = vset.pattern.permute.xlu0 %v1160_v0  ;;  %v390_v23 = vlaneseq  ;;  %vm401_vm3 = vcmask 130048   ;;  %vm463_vm14 = vcmask 122880   ;;  %v1161_v57 = vmov 1.0  }
  0x16   : > { %s964_s8 = sshll.u32 %s1249_s7, 2  ;;  %s1019_s12 = sshll.u32 %s1249_s7, 4 }
  0x17   : > { %s314_s11 = scalar_lea.vmem %s1451_s3, %s964_s8  ;;  %s302_s15 = scalar_lea.vmem %s1449_s1, %s1019_s12  ;;  %v391_v27 = vshrl.u32 %v390_v23, 7 }
  0x18   : > { %v328_v1 = vld [vmem:[%s314_s11] sm:$0xf]  ;;  %s307_s24 = scalar_lea.vmem %s1450_s2, %s1019_s12  ;;  %v325_v4 = vld [vmem:[%s302_s15 + $0x8] sm:$0xff]  ;;  %s297_s10 = scalar_lea.vmem %s1448_s0, %s964_s8 }
  0x19   : > { %972 = vmatpush.msk.msra.mxu0 %vm336_vm0, %v328_v1  ;;  %v324_v2 = vld [vmem:[%s302_s15] sm:$0xff]  ;;  %v327_v5 = vld [vmem:[%s307_s24 + $0x8] sm:$0xff]  ;;  %v363_v6 = vmul.f32 %v328_v1, %v328_v1  ;;  %v392_v30 = vadd.s32 8, %v391_v27  ;;  %s1295_s8 = scalar_lea.vmem [#allocation2], %s963_s27  ;;  %s1016_s11 = sshll.u32 %s1150_s21, 3 }
  0x1a   : > { %v326_v3 = vld [vmem:[%s307_s24] sm:$0xff]  ;;  %973 = vmatmul.msk.f32.vlgmr.msra.gmra.mxu0 %vm329_vm1, %v324_v2  ;;  %s810_s14 = scalar_lea.hbm %s1453_s5, %s1016_s11  ;;  %s812_s15 = sshll.u32 %s1295_s8, 4  ;;  %s813_s15 = int_to_ptr.vmem [resolvable:$true] %s812_s15 }
  0x1b   : > { %374 = vperm.xlu0 %1079, %v326_v3   ;;  %v365_v7 = vsel %vm364_vm2, %v363_v6, 0.0  ;;  %v1290_v56 = vld [vmem:[%s297_s10] sm:$0xf]  ;;  %s814_s16 = sshll.u32 %s810_s14, 4  ;;  %s796_s21 = scalar_lea.sflag [#allocation3], %s291_s25  ;;  %s815_s16 = int_to_ptr.hbm [resolvable:$true] %s814_s16 }
  0x1c   : > { %v366_v8 = vrot.slane %v365_v7, 4  ;;  %s1094_s17 = sshra.s32 %s815_s16, 4  ;;  %s1095_s17 = int_to_ptr.hbm [resolvable:$true] %s1094_s17 }
  0x1d   : > { %s1096_s24 = scalar_lea.hbm %s1095_s17, 8  ;;  %p1101_p1 = scmp.lt.s32.totalorder %s1095_s17, %s1453_s5 }
  0x1e   : > { %v367_v9 = vadd.f32 %v366_v8, %v365_v7  ;;  %p1097_p12 = scmp.ne.s32.totalorder %s1095_s17, %s1096_s24  ;;  %p1102_p2 = scmp.lt.s32.totalorder %s1100_s9, %s1096_s24 }
  0x20   : > { %v368_v10 = vrot.slane %v367_v9, 2  ;;  %p1098_p13 = pnand %p1097_p12, %p1232_p4  ;;  %p1103_p3 = por %p1102_p2, %p1101_p1 }
  0x22   : > { %974 = vmatmul.msk.f32.gmra.mxu0 %vm329_vm1, %v325_v4  ;;  %v369_v11 = vadd.f32 %v368_v10, %v367_v9  ;;  %p1099_p0 = pneg %p1098_p13 }
  0x23   : > { %379 = vperm.xlu0 %1079, %v327_v5  }
  0x24   : > { %v370_v12 = vrot.slane %v369_v11, 1  ;;  %p1104_p5 = pnand %p1103_p3, %p1099_p0 }
  0x26   : > { %v371_v13 = vadd.f32 %v370_v12, %v369_v11 }
  0x8d   : > { %v375_v14 = vpop.permute.xlu0 %374 }
  0x8e   : > { %v382_v15 = vadd.f32 %v375_v14, %v371_v13 }
  0x95   : > { %v380_v20 = vpop.permute.xlu0 %379 }
  0x96   : > { %v383_v22 = vadd.f32 %v380_v20, %v371_v13 }
  0x97   : > { %v357_v16 = vpop.f32.mrf.mxu0 }
  0x98   : > { %v384_v17 = vmul.f32 2.0, %v357_v16 }
  0x9a   : > { %v386_v18 = vsub.f32 %v382_v15, %v384_v17 }
  0x9c   : > { %v388_v19 = vmax.f32 %v386_v18, 0.0 }
  0x9e   : > { %v395_v24 = vshra.s32 %v388_v19, 4 }
  0x9f   : > { %v360_v21 = vpop.f32.mrf.mxu0 }
  0xa0   : > { %v385_v25 = vmul.f32 2.0, %v360_v21  ;;  %v397_v28 = vshll.u32 %v395_v24, 4 }
  0xa2   : > { %v387_v26 = vsub.f32 %v383_v22, %v385_v25  ;;  %v1265_v32 = vor.u32 %v397_v28, %v391_v27 }
  0xa4   : > { %v389_v29 = vmax.f32 %v387_v26, 0.0  ;;  %v402_v35 = vsel %vm401_vm3, %v1265_v32, 2147483647 }
  0xa6   : > { %v396_v31 = vshra.s32 %v389_v29, 4 }
  0xa8   : > { %v398_v33 = vshll.u32 %v396_v31, 4 }
  0xaa   : > { %v1267_v34 = vor.u32 %v398_v33, %v392_v30 }
  0xac   : > { %v403_v36 = vsel %vm401_vm3, %v1267_v34, 2147483647 }
  0xad   : > { %vm404_vm4 = vcmp.lt.s32.totalorder %v402_v35, %v403_v36 }
  0xae   : > { %v405_v37 = vsel %vm404_vm4, %v402_v35, %v403_v36 }
  0xaf   : > { %v406_v38 = vrot.slane %v405_v37, 4 }
  0xb1   : > { %vm407_vm5 = vcmp.lt.s32.totalorder %v405_v37, %v406_v38 }
  0xb2   : > { %v408_v39 = vsel %vm407_vm5, %v405_v37, %v406_v38 }
  0xb3   : > { %v409_v40 = vrot.slane %v408_v39, 2 }
  0xb5   : > { %vm410_vm6 = vcmp.lt.s32.totalorder %v408_v39, %v409_v40 }
  0xb6   : > { %v411_v41 = vsel %vm410_vm6, %v408_v39, %v409_v40 }
  0xb7   : > { %v412_v42 = vrot.slane %v411_v41, 1 }
  0xb9   : > { %vm413_vm7 = vcmp.lt.s32.totalorder %v411_v41, %v412_v42 }
  0xba   : > { %v414_v43 = vsel %vm413_vm7, %v411_v41, %v412_v42 }
  0xbb   : > { %vm415_vm8 = vcmp.gt.s32.totalorder %v1265_v32, %v414_v43  ;;  %vm416_vm9 = vcmp.gt.s32.totalorder %v1267_v34, %v414_v43 }
  0xbc   : > { %v417_v44 = vsel %vm415_vm8, %v1265_v32, 2147483647  ;;  %v418_v45 = vsel %vm416_vm9, %v1267_v34, 2147483647 }
  0xbd   : > { %v419_v46 = vsel %vm401_vm3, %v417_v44, 2147483647  ;;  %v420_v47 = vsel %vm401_vm3, %v418_v45, 2147483647 }
  0xbe   : > { %vm421_vm10 = vcmp.lt.s32.totalorder %v419_v46, %v420_v47 }
  0xbf   : > { %v422_v48 = vsel %vm421_vm10, %v419_v46, %v420_v47 }
  0xc0   : > { %v423_v49 = vrot.slane %v422_v48, 4 }
  0xc2   : > { %vm424_vm11 = vcmp.lt.s32.totalorder %v422_v48, %v423_v49 }
  0xc3   : > { %v425_v50 = vsel %vm424_vm11, %v422_v48, %v423_v49 }
  0xc4   : > { %v426_v51 = vrot.slane %v425_v50, 2 }
  0xc6   : > { %vm427_vm12 = vcmp.lt.s32.totalorder %v425_v50, %v426_v51 }
  0xc7   : > { %v428_v52 = vsel %vm427_vm12, %v425_v50, %v426_v51 }
  0xc8   : > { %v429_v53 = vrot.slane %v428_v52, 1 }
  0xca   : > { %vm430_vm13 = vcmp.lt.s32.totalorder %v428_v52, %v429_v53 }
  0xcb   : > { %v431_v54 = vsel %vm430_vm13, %v428_v52, %v429_v53 }
  0xcc   : > { %vm433_vm15 = vcmp.eq.s32.totalorder %v1267_v34, %v431_v54  ;;  %v462_v55 = vand.u32 15, %v431_v54  ;;  %vm465_vm0 = vcmp.gt.s32.totalorder %v1265_v32, %v431_v54  ;;  %vm466_vm1 = vcmp.gt.s32.totalorder %v1267_v34, %v431_v54 }
  0xcd   : > { %977 = vmatpush.msk.msra.mxu1 %vm433_vm15, %v1161_v57  ;;  %v467_v58 = vsel %vm465_vm0, %v1265_v32, 2147483647  ;;  %v468_v59 = vsel %vm466_vm1, %v1267_v34, 2147483647  ;;  %vm432_vm4 = vcmp.eq.s32.totalorder %v1265_v32, %v431_v54 }
  0xce   : > { %464 = vst.msk [vmem:[%s1295_s8] sm:$0x1] %vm463_vm14, %v462_v55  ;;  %v469_v60 = vsel %vm401_vm3, %v467_v58, 2147483647  ;;  %v470_v61 = vsel %vm401_vm3, %v468_v59, 2147483647 }
  0xcf   : > { %978 = vmatpush.msk.msra.mxu1 %vm432_vm4, %v1161_v57  ;;  %vm471_vm5 = vcmp.lt.s32.totalorder %v469_v60, %v470_v61 }
  0xd0   : > { %v472_v62 = vsel %vm471_vm5, %v469_v60, %v470_v61  ;;  %979 = vmatmul.msk.f32.vlgmr.msra.gmra.mxu1 %vm401_vm3, %v1290_v56 }
  0xd1   : > { %v473_v63 = vrot.slane %v472_v62, 4 }
  0xd3   : > { %vm474_vm6 = vcmp.lt.s32.totalorder %v472_v62, %v473_v63 }
  0xd4   : > { %v475_v0 = vsel %vm474_vm6, %v472_v62, %v473_v63 }
  0xd5   : > { %v476_v1 = vrot.slane %v475_v0, 2 }
  0xd7   : > { %vm477_vm7 = vcmp.lt.s32.totalorder %v475_v0, %v476_v1 }
  0xd8   : > { %v478_v2 = vsel %vm477_vm7, %v475_v0, %v476_v1 }
  0xd9   : > { %v479_v3 = vrot.slane %v478_v2, 1 }
  0xdb   : > { %vm480_vm8 = vcmp.lt.s32.totalorder %v478_v2, %v479_v3 }
  0xdc   : > { %v481_v4 = vsel %vm480_vm8, %v478_v2, %v479_v3 }
  0xdd   : > { %vm483_vm9 = vcmp.eq.s32.totalorder %v1267_v34, %v481_v4  ;;  %v509_v5 = vand.u32 15, %v481_v4  ;;  %vm511_vm10 = vcmp.gt.s32.totalorder %v1265_v32, %v481_v4  ;;  %vm512_vm11 = vcmp.gt.s32.totalorder %v1267_v34, %v481_v4 }
  0xde   : > { %982 = vmatpush.msk.msra.mxu2 %vm483_vm9, %v1161_v57  ;;  %v513_v6 = vsel %vm511_vm10, %v1265_v32, 2147483647  ;;  %v514_v7 = vsel %vm512_vm11, %v1267_v34, 2147483647  ;;  %vm482_vm12 = vcmp.eq.s32.totalorder %v1265_v32, %v481_v4 }
  0xdf   : > { %510 = vst.msk [vmem:[%s1295_s8 + $0x1] sm:$0x1] %vm463_vm14, %v509_v5  ;;  %v515_v8 = vsel %vm401_vm3, %v513_v6, 2147483647  ;;  %v516_v9 = vsel %vm401_vm3, %v514_v7, 2147483647 }
  0xe0   : > { %983 = vmatpush.msk.msra.mxu2 %vm482_vm12, %v1161_v57  ;;  %vm517_vm13 = vcmp.lt.s32.totalorder %v515_v8, %v516_v9 }
  0xe1   : > { %v518_v10 = vsel %vm517_vm13, %v515_v8, %v516_v9  ;;  %984 = vmatmul.msk.f32.vlgmr.msra.gmra.mxu2 %vm401_vm3, %v1290_v56 }
  0xe2   : > { %v519_v11 = vrot.slane %v518_v10, 4 }
  0xe4   : > { %vm520_vm15 = vcmp.lt.s32.totalorder %v518_v10, %v519_v11 }
  0xe5   : > { %v521_v12 = vsel %vm520_vm15, %v518_v10, %v519_v11 }
  0xe6   : > { %v522_v13 = vrot.slane %v521_v12, 2 }
  0xe8   : > { %vm523_vm0 = vcmp.lt.s32.totalorder %v521_v12, %v522_v13 }
  0xe9   : > { %v524_v14 = vsel %vm523_vm0, %v521_v12, %v522_v13 }
  0xea   : > { %v525_v15 = vrot.slane %v524_v14, 1 }
  0xec   : > { %vm526_vm1 = vcmp.lt.s32.totalorder %v524_v14, %v525_v15 }
  0xed   : > { %v527_v16 = vsel %vm526_vm1, %v524_v14, %v525_v15 }
  0xee   : > { %vm529_vm4 = vcmp.eq.s32.totalorder %v1267_v34, %v527_v16  ;;  %v555_v17 = vand.u32 15, %v527_v16  ;;  %vm557_vm5 = vcmp.gt.s32.totalorder %v1265_v32, %v527_v16  ;;  %vm558_vm6 = vcmp.gt.s32.totalorder %v1267_v34, %v527_v16 }
  0xef   : > { %987 = vmatpush.msk.msra.mxu3 %vm529_vm4, %v1161_v57  ;;  %v559_v18 = vsel %vm557_vm5, %v1265_v32, 2147483647  ;;  %v560_v19 = vsel %vm558_vm6, %v1267_v34, 2147483647  ;;  %vm528_vm7 = vcmp.eq.s32.totalorder %v1265_v32, %v527_v16 }
  0xf0   : > { %556 = vst.msk [vmem:[%s1295_s8 + $0x2] sm:$0x1] %vm463_vm14, %v555_v17  ;;  %v561_v20 = vsel %vm401_vm3, %v559_v18, 2147483647  ;;  %v562_v21 = vsel %vm401_vm3, %v560_v19, 2147483647 }
  0xf1   : > { %vm563_vm8 = vcmp.lt.s32.totalorder %v561_v20, %v562_v21  ;;  %988 = vmatpush.msk.msra.mxu3 %vm528_vm7, %v1161_v57 }
  0xf2   : > { %v564_v22 = vsel %vm563_vm8, %v561_v20, %v562_v21  ;;  %989 = vmatmul.msk.f32.vlgmr.msra.gmra.mxu3 %vm401_vm3, %v1290_v56 }
  0xf3   : > { %v565_v23 = vrot.slane %v564_v22, 4 }
  0xf5   : > { %vm566_vm9 = vcmp.lt.s32.totalorder %v564_v22, %v565_v23 }
  0xf6   : > { %v567_v24 = vsel %vm566_vm9, %v564_v22, %v565_v23 }
  0xf7   : > { %v568_v25 = vrot.slane %v567_v24, 2 }
  0xf9   : > { %vm569_vm10 = vcmp.lt.s32.totalorder %v567_v24, %v568_v25 }
  0xfa   : > { %v570_v26 = vsel %vm569_vm10, %v567_v24, %v568_v25 }
  0xfb   : > { %v571_v27 = vrot.slane %v570_v26, 1 }
  0xfd   : > { %vm572_vm11 = vcmp.lt.s32.totalorder %v570_v26, %v571_v27 }
  0xfe   : > { %v573_v28 = vsel %vm572_vm11, %v570_v26, %v571_v27 }
  0xff   : > { %vm575_vm12 = vcmp.eq.s32.totalorder %v1267_v34, %v573_v28  ;;  %v601_v29 = vand.u32 15, %v573_v28  ;;  %vm603_vm13 = vcmp.gt.s32.totalorder %v1265_v32, %v573_v28  ;;  %vm604_vm15 = vcmp.gt.s32.totalorder %v1267_v34, %v573_v28 }
 0x100   : > { %992 = vmatpush.msk.msrb.mxu1 %vm575_vm12, %v1161_v57  ;;  %v605_v30 = vsel %vm603_vm13, %v1265_v32, 2147483647  ;;  %v606_v31 = vsel %vm604_vm15, %v1267_v34, 2147483647  ;;  %vm574_vm0 = vcmp.eq.s32.totalorder %v1265_v32, %v573_v28 }
 0x101   : > { %602 = vst.msk [vmem:[%s1295_s8 + $0x3] sm:$0x1] %vm463_vm14, %v601_v29  ;;  %v607_v33 = vsel %vm401_vm3, %v605_v30, 2147483647  ;;  %v608_v35 = vsel %vm401_vm3, %v606_v31, 2147483647 }
 0x102   : > { %993 = vmatpush.msk.msrb.mxu1 %vm574_vm0, %v1161_v57  ;;  %vm609_vm1 = vcmp.lt.s32.totalorder %v607_v33, %v608_v35 }
 0x103   : > { %v610_v36 = vsel %vm609_vm1, %v607_v33, %v608_v35  ;;  %994 = vmatmul.msk.f32.vlgmr.msrb.gmra.mxu1 %vm401_vm3, %v1290_v56 }
 0x104   : > { %v611_v37 = vrot.slane %v610_v36, 4 }
 0x106   : > { %vm612_vm4 = vcmp.lt.s32.totalorder %v610_v36, %v611_v37 }
 0x107   : > { %v613_v38 = vsel %vm612_vm4, %v610_v36, %v611_v37 }
 0x108   : > { %v614_v39 = vrot.slane %v613_v38, 2 }
 0x10a   : > { %vm615_vm5 = vcmp.lt.s32.totalorder %v613_v38, %v614_v39 }
 0x10b   : > { %v616_v40 = vsel %vm615_vm5, %v613_v38, %v614_v39 }
 0x10c   : > { %v617_v41 = vrot.slane %v616_v40, 1 }
 0x10e   : > { %vm618_vm6 = vcmp.lt.s32.totalorder %v616_v40, %v617_v41 }
 0x10f   : > { %v619_v42 = vsel %vm618_vm6, %v616_v40, %v617_v41 }
 0x110   : > { %vm621_vm7 = vcmp.eq.s32.totalorder %v1267_v34, %v619_v42  ;;  %v647_v43 = vand.u32 15, %v619_v42  ;;  %vm649_vm8 = vcmp.gt.s32.totalorder %v1265_v32, %v619_v42  ;;  %vm650_vm9 = vcmp.gt.s32.totalorder %v1267_v34, %v619_v42 }
 0x111   : > { %997 = vmatpush.msk.msrb.mxu2 %vm621_vm7, %v1161_v57  ;;  %v651_v44 = vsel %vm649_vm8, %v1265_v32, 2147483647  ;;  %v652_v45 = vsel %vm650_vm9, %v1267_v34, 2147483647  ;;  %vm620_vm10 = vcmp.eq.s32.totalorder %v1265_v32, %v619_v42 }
 0x112   : > { %648 = vst.msk [vmem:[%s1295_s8 + $0x4] sm:$0x1] %vm463_vm14, %v647_v43  ;;  %v653_v46 = vsel %vm401_vm3, %v651_v44, 2147483647  ;;  %v654_v47 = vsel %vm401_vm3, %v652_v45, 2147483647 }
 0x113   : > { %998 = vmatpush.msk.msrb.mxu2 %vm620_vm10, %v1161_v57  ;;  %vm655_vm11 = vcmp.lt.s32.totalorder %v653_v46, %v654_v47 }
 0x114   : > { %v656_v48 = vsel %vm655_vm11, %v653_v46, %v654_v47  ;;  %999 = vmatmul.msk.f32.vlgmr.msrb.gmra.mxu2 %vm401_vm3, %v1290_v56 }
 0x115   : > { %v657_v49 = vrot.slane %v656_v48, 4 }
 0x117   : > { %vm658_vm12 = vcmp.lt.s32.totalorder %v656_v48, %v657_v49 }
 0x118   : > { %v659_v50 = vsel %vm658_vm12, %v656_v48, %v657_v49 }
 0x119   : > { %v660_v51 = vrot.slane %v659_v50, 2 }
 0x11b   : > { %vm661_vm13 = vcmp.lt.s32.totalorder %v659_v50, %v660_v51 }
 0x11c   : > { %v662_v52 = vsel %vm661_vm13, %v659_v50, %v660_v51 }
 0x11d   : > { %v663_v53 = vrot.slane %v662_v52, 1 }
 0x11f   : > { %vm664_vm15 = vcmp.lt.s32.totalorder %v662_v52, %v663_v53 }
 0x120   : > { %v665_v54 = vsel %vm664_vm15, %v662_v52, %v663_v53 }
 0x121   : > { %vm667_vm0 = vcmp.eq.s32.totalorder %v1267_v34, %v665_v54  ;;  %v693_v55 = vand.u32 15, %v665_v54  ;;  %vm695_vm1 = vcmp.gt.s32.totalorder %v1265_v32, %v665_v54  ;;  %vm696_vm4 = vcmp.gt.s32.totalorder %v1267_v34, %v665_v54 }
 0x122   : > { %1002 = vmatpush.msk.msrb.mxu3 %vm667_vm0, %v1161_v57  ;;  %v697_v58 = vsel %vm695_vm1, %v1265_v32, 2147483647  ;;  %v698_v59 = vsel %vm696_vm4, %v1267_v34, 2147483647  ;;  %vm666_vm5 = vcmp.eq.s32.totalorder %v1265_v32, %v665_v54 }
 0x123   : > { %694 = vst.msk [vmem:[%s1295_s8 + $0x5] sm:$0x1] %vm463_vm14, %v693_v55  ;;  %v699_v60 = vsel %vm401_vm3, %v697_v58, 2147483647  ;;  %v700_v61 = vsel %vm401_vm3, %v698_v59, 2147483647 }
 0x124   : > { %1003 = vmatpush.msk.msrb.mxu3 %vm666_vm5, %v1161_v57  ;;  %vm701_vm6 = vcmp.lt.s32.totalorder %v699_v60, %v700_v61 }
 0x125   : > { %v702_v62 = vsel %vm701_vm6, %v699_v60, %v700_v61  ;;  %1004 = vmatmul.msk.f32.vlgmr.msrb.gmra.mxu3 %vm401_vm3, %v1290_v56 }
 0x126   : > { %v703_v63 = vrot.slane %v702_v62, 4 }
 0x128   : > { %vm704_vm7 = vcmp.lt.s32.totalorder %v702_v62, %v703_v63 }
 0x129   : > { %v705_v0 = vsel %vm704_vm7, %v702_v62, %v703_v63 }
 0x12a   : > { %v706_v1 = vrot.slane %v705_v0, 2 }
 0x12c   : > { %vm707_vm8 = vcmp.lt.s32.totalorder %v705_v0, %v706_v1 }
 0x12d   : > { %v708_v2 = vsel %vm707_vm8, %v705_v0, %v706_v1 }
 0x12e   : > { %v709_v3 = vrot.slane %v708_v2, 1 }
 0x130   : > { %vm710_vm9 = vcmp.lt.s32.totalorder %v708_v2, %v709_v3 }
 0x131   : > { %v711_v4 = vsel %vm710_vm9, %v708_v2, %v709_v3 }
 0x132   : > { %vm713_vm10 = vcmp.eq.s32.totalorder %v1267_v34, %v711_v4  ;;  %v739_v5 = vand.u32 15, %v711_v4  ;;  %vm741_vm11 = vcmp.gt.s32.totalorder %v1265_v32, %v711_v4  ;;  %vm742_vm12 = vcmp.gt.s32.totalorder %v1267_v34, %v711_v4 }
 0x133   : > { %1007 = vmatpush.msk.msrb.mxu0 %vm713_vm10, %v1161_v57  ;;  %v743_v6 = vsel %vm741_vm11, %v1265_v32, 2147483647  ;;  %v744_v7 = vsel %vm742_vm12, %v1267_v34, 2147483647  ;;  %vm712_vm13 = vcmp.eq.s32.totalorder %v1265_v32, %v711_v4 }
 0x134   : > { %740 = vst.msk [vmem:[%s1295_s8 + $0x6] sm:$0x1] %vm463_vm14, %v739_v5  ;;  %v745_v8 = vsel %vm401_vm3, %v743_v6, 2147483647  ;;  %v746_v9 = vsel %vm401_vm3, %v744_v7, 2147483647 }
 0x135   : > { %1008 = vmatpush.msk.msrb.mxu0 %vm712_vm13, %v1161_v57  ;;  %vm747_vm15 = vcmp.lt.s32.totalorder %v745_v8, %v746_v9 }
 0x136   : > { %v748_v10 = vsel %vm747_vm15, %v745_v8, %v746_v9  ;;  %1009 = vmatmul.msk.f32.vlgmr.msrb.gmra.mxu0 %vm401_vm3, %v1290_v56 }
 0x137   : > { %v749_v11 = vrot.slane %v748_v10, 4 }
 0x139   : > { %vm750_vm0 = vcmp.lt.s32.totalorder %v748_v10, %v749_v11 }
 0x13a   : > { %v751_v12 = vsel %vm750_vm0, %v748_v10, %v749_v11 }
 0x13b   : > { %v752_v13 = vrot.slane %v751_v12, 2 }
 0x13d   : > { %vm753_vm1 = vcmp.lt.s32.totalorder %v751_v12, %v752_v13 }
 0x13e   : > { %v754_v14 = vsel %vm753_vm1, %v751_v12, %v752_v13 }
 0x13f   : > { %v755_v15 = vrot.slane %v754_v14, 1 }
 0x141   : > { %vm756_vm4 = vcmp.lt.s32.totalorder %v754_v14, %v755_v15 }
 0x142   : > { %v757_v16 = vsel %vm756_vm4, %v754_v14, %v755_v15 }
 0x143   : > { %vm759_vm5 = vcmp.eq.s32.totalorder %v1267_v34, %v757_v16  ;;  %v785_v17 = vand.u32 15, %v757_v16  ;;  %vm758_vm6 = vcmp.eq.s32.totalorder %v1265_v32, %v757_v16 }
 0x144   : > { %1012 = vmatpush.msk.msra.mxu1 %vm759_vm5, %v1161_v57 }
 0x145   : > { %786 = vst.msk [vmem:[%s1295_s8 + $0x7] sm:$0x1] %vm463_vm14, %v785_v17 }
 0x146   : > { %1013 = vmatpush.msk.msra.mxu1 %vm758_vm6, %v1161_v57 }
 0x147   : > { %1014 = vmatmul.msk.f32.vlgmr.msra.gmra.mxu1 %vm401_vm3, %v1290_v56 }
 0x148   : > { %1107 = shalt.err (!%p1104_p5)
}
 0x149   : > { %1022 = dma.vmem_to_hbm [thread:$0]  (%p1232_p4), %s813_s15, 128, %s815_s16, %s796_s21  }
 0x14a   : > { %s1021_s25 = sshll.u32 %s1249_s7, 5 }
 0x14b   : > { %s322_s13 = scalar_lea.vmem %s1452_s4, %s1021_s25 }
 0x14d   : > { %v458_v32 = vpop.f32.mrf.mxu1 }
 0x14e   : > { %461 = vst.msk [vmem:[%s322_s13] sm:$0xf] %vm364_vm2, %v458_v32 }
 0x164   : > { %v505_v34 = vpop.f32.mrf.mxu2 }
 0x165   : > { %508 = vst.msk [vmem:[%s322_s13 + $0x4] sm:$0xf] %vm364_vm2, %v505_v34 }
 0x175   : > { %v551_v56 = vpop.f32.mrf.mxu3 }
 0x176   : > { %554 = vst.msk [vmem:[%s322_s13 + $0x8] sm:$0xf] %vm364_vm2, %v551_v56 }
 0x180   : > { %v597_v57 = vpop.f32.mrf.mxu1 }
 0x181   : > { %600 = vst.msk [vmem:[%s322_s13 + $0xc] sm:$0xf] %vm364_vm2, %v597_v57 }
 0x197   : > { %v643_v18 = vpop.f32.mrf.mxu2 }
 0x198   : > { %646 = vst.msk [vmem:[%s322_s13 + $0x10] sm:$0xf] %vm364_vm2, %v643_v18 }
 0x1a8   : > { %v689_v19 = vpop.f32.mrf.mxu3 }
 0x1a9   : > { %692 = vst.msk [vmem:[%s322_s13 + $0x14] sm:$0xf] %vm364_vm2, %v689_v19 }
 0x1b3   : > { %v735_v20 = vpop.f32.mrf.mxu0 }
 0x1b4   : > { %738 = vst.msk [vmem:[%s322_s13 + $0x18] sm:$0xf] %vm364_vm2, %v735_v20 }
 0x1c4   : > { %v781_v21 = vpop.f32.mrf.mxu1 }
 0x1c5   : > { %784 = vst.msk [vmem:[%s322_s13 + $0x1c] sm:$0xf] %vm364_vm2, %v781_v21 }
 0x1c6 PF: > { %p1028_p4 = scmp.ge.s32.totalorder %s1158_s23, 2  ;;  %s837_s28 = sand.u32 1, %s1138_s18  }
 0x1c7   : > { %s838_s7 = scalar_lea.sflag [#allocation3], %s837_s28 }
 0x1c8   : > { %p1025_p6 = pnand %p1028_p4, %p1239_p8 }
 0x1ca   : > { %p1026_p7 = pneg %p1025_p6 }
 0x1cc   : > { %1133 = dma.done.wait (%p1026_p7), %s838_s7, 128  }
 0x1cd   : > { %1135 = vsyncadd (%p1026_p7), %s838_s7, 4294967168  ;;  %s19_s23 = sadd.s32 1, %s1158_s23   ;;  %s1456_s18 = smov %s1142_s19 }
 0x1ce   : > { %p16_p9 = scmp.ge.s32.totalorder %s19_s23, 4   ;;  %s1457_s19 = smov %s1146_s20 }
 0x1cf   : > { %s1458_s20 = smov %s1245_s6  ;;  %s1459_s21 = smov %s1154_s22 }
 0x1d0   : > { %s1460_s22 = smov %s1462_s26  ;;  %18 = sbr.rel (!%p16_p9) target bundleno = 4 (0x4), region = 92 }
 0x1d5   :  { %844 = vsyncpa [#allocation3], 1 }
 0x1d6   :  { %846 = vsyncpa [#allocation3 + $0x1], 1 }

</bundles_post_ra>
